<compile_context>
chip_gen: v5e
topology: v5e:2x2
jax: 0.10.0
libtpu: 0.0.40
codegen_flags: <defaults>
</compile_context>

<pallas_src>
import math
import jax
import jax.numpy as jnp
from jax import lax
from jax.experimental import pallas as pl
from jax.experimental.pallas import tpu as pltpu

# Config (MiniMindConfig defaults, shrunk hidden size for the demo)
N_ROUTED_EXPERTS = 4
TOP_K = 2
NORM_TOPK_PROB = True
HIDDEN = 32
BATCH = 2
SEQ = 8


def _round_up(x, m):
    return ((x + m - 1) // m) * m


def moe_gate_kernel(x_ref, wt_ref, topk_idx_ref, topk_w_ref):
    # x_ref: (TM, H) tokens ; wt_ref: (H, E) pre-transposed gate weight
    x = x_ref[...]
    wt = wt_ref[...]

    # logits = F.linear(x, W) = x @ W.T ; weight already transposed to (H, E)
    # in the wrapper, so no in-kernel transpose.  Accumulate in f32.
    logits = jnp.dot(x, wt, preferred_element_type=jnp.float32)   # (TM, E)

    n_experts = logits.shape[-1]
    eids = lax.broadcasted_iota(jnp.int32, logits.shape, 1)

    if TOP_K > 1 and NORM_TOPK_PROB:
        # Softmax denominator cancels in the top-k renormalization and exp is
        # monotone, so top-k runs on raw logits; exp only on selected values.
        work = logits
    else:
        # Need true softmax values when they are not renormalized afterwards.
        m = jnp.max(logits, axis=-1, keepdims=True)
        e = jnp.exp(logits - m)
        work = e * pl.reciprocal(jnp.sum(e, axis=-1, keepdims=True))

    # Iterative argmax top-k (E is tiny).  Ties resolve to lowest expert index
    # (first occurrence), matching the reference top-k used for validation.
    vals = []
    idxs = []
    for _ in range(TOP_K):
        vmax = jnp.max(work, axis=-1, keepdims=True)              # (TM, 1)
        idx = jnp.min(jnp.where(work >= vmax, eids, n_experts),
                      axis=-1, keepdims=True)                     # (TM, 1) i32
        vals.append(vmax)
        idxs.append(idx)
        work = jnp.where(eids == idx, -jnp.inf, work)

    if TOP_K > 1 and NORM_TOPK_PROB:
        # weights_k = exp(v_k - v_0) / (sum_j exp(v_j - v_0) + eps)
        # v_0 is the row max, so every exponent is <= 0 (stable); exp(0) == 1.
        exps = [jnp.ones_like(vals[0])]
        for v in vals[1:]:
            exps.append(jnp.exp(v - vals[0]))
        denom = exps[0]
        for e_ in exps[1:]:
            denom = denom + e_
        # NOTE: epsilon applied at un-normalized-exp scale (diff ~1e-20 only).
        inv = pl.reciprocal(denom + 1e-20)   # exact; approx would add ~2^-12 rel err
        for k in range(TOP_K):
            topk_idx_ref[:, k:k + 1] = idxs[k]
            topk_w_ref[:, k:k + 1] = exps[k] * inv
    else:
        for k in range(TOP_K):
            topk_idx_ref[:, k:k + 1] = idxs[k]
            topk_w_ref[:, k:k + 1] = vals[k]


def moe_gate(hidden_states, weight, *, tm=512):
    """hidden_states: (B, S, H), weight: (E, H).
    Returns (topk_idx (T,K) int32, topk_weight (T,K) f32, aux_loss)."""
    b, s, h = hidden_states.shape
    n_experts, _ = weight.shape

    x = hidden_states.reshape(-1, h)
    t = x.shape[0]

    # Row tile: multiple of 8, large enough to amortize per-step DMA overhead,
    # capped by the (padded) token count so tiny inputs don't over-pad.
    tm = min(tm, _round_up(t, 8))
    t_pad = _round_up(t, tm)
    if t_pad != t:
        x = jnp.pad(x, ((0, t_pad - t), (0, 0)))

    # Pre-transpose the gate weight (layout plumbing is free in the wrapper;
    # keeps the XLU free inside the kernel).
    w_t = weight.T  # (H, E)

    itemsize = jnp.dtype(x.dtype).itemsize
    # Double-buffered input tiles + outputs, with headroom; clamp to a budget
    # that is safe on every generation (v7x physical VMEM is 64 MiB).
    est = 2 * (tm * h * itemsize + h * n_experts * itemsize
               + 2 * tm * TOP_K * 4) + (1 << 20)
    vmem_limit = int(min(60 * 1024 * 1024, max(16 * 1024 * 1024, 2 * est)))

    n_transcendental = (TOP_K - 1) if (TOP_K > 1 and NORM_TOPK_PROB) else n_experts
    cost = pl.CostEstimate(
        flops=2 * t_pad * h * n_experts,
        transcendentals=t_pad * n_transcendental,
        bytes_accessed=t_pad * h * itemsize + h * n_experts * itemsize
                       + 2 * t_pad * TOP_K * 4,
    )

    topk_idx, topk_w = pl.pallas_call(
        moe_gate_kernel,
        out_shape=(
            jax.ShapeDtypeStruct((t_pad, TOP_K), jnp.int32),
            jax.ShapeDtypeStruct((t_pad, TOP_K), jnp.float32),
        ),
        grid=(t_pad // tm,),
        in_specs=[
            pl.BlockSpec((tm, h), lambda i: (i, 0)),
            pl.BlockSpec((h, n_experts), lambda i: (0, 0)),
        ],
        out_specs=(
            pl.BlockSpec((tm, TOP_K), lambda i: (i, 0)),
            pl.BlockSpec((tm, TOP_K), lambda i: (i, 0)),
        ),
        compiler_params=pltpu.CompilerParams(
            dimension_semantics=("parallel",),
            vmem_limit_bytes=vmem_limit,
        ),
        cost_estimate=cost,
    )(x, w_t)

    # Drop pad rows.
    topk_idx = topk_idx[:t]
    topk_w = topk_w[:t]

    # TODO(synk): training-time aux_loss (seq_aux scatter_add path) not
    # implemented; eval mode returns 0 exactly like the reference module.
    aux_loss = 0.0
    return topk_idx, topk_w, aux_loss


def init_gate_weight(key, n_experts, gating_dim):
    # kaiming_uniform_(a=sqrt(5)) on a (E, H) weight: bound = 1/sqrt(fan_in)
    bound = 1.0 / math.sqrt(gating_dim)
    return jax.random.uniform(
        key, (n_experts, gating_dim), dtype=jnp.float32,
        minval=-bound, maxval=bound)


if __name__ == "__main__":
    key = jax.random.PRNGKey(0)
    kx, kw = jax.random.split(key)

    hidden_states = jax.random.normal(kx, (BATCH, SEQ, HIDDEN), dtype=jnp.float32)
    weight = init_gate_weight(kw, N_ROUTED_EXPERTS, HIDDEN)

    topk_idx, topk_w, aux_loss = moe_gate(hidden_states, weight)
    jax.block_until_ready((topk_idx, topk_w))

    # Sanity check against a plain-JAX reference (full softmax path).
    x = hidden_states.reshape(-1, HIDDEN)
    logits = x @ weight.T
    scores = jax.nn.softmax(logits, axis=-1)
    ref_w, ref_idx = lax.top_k(scores, TOP_K)
    if TOP_K > 1 and NORM_TOPK_PROB:
        ref_w = ref_w / (jnp.sum(ref_w, axis=-1, keepdims=True) + 1e-20)
    assert topk_idx.shape == (BATCH * SEQ, TOP_K)
    assert jnp.all(topk_idx == ref_idx.astype(jnp.int32))
    assert jnp.allclose(topk_w, ref_w, atol=1e-5)

    print("KERNEL_OK")
</pallas_src>

<mosaic_0001>
module attributes {stable_mosaic.version = 11 : i64} {
  func.func @moe_gate_kernel(%arg0: i32, %arg1: memref<16x32xf32, #tpu.memory_space<vmem>>, %arg2: memref<32x4xf32, #tpu.memory_space<vmem>>, %arg3: memref<16x2xi32, #tpu.memory_space<vmem>>, %arg4: memref<16x2xf32, #tpu.memory_space<vmem>>) attributes {dimension_semantics = [#tpu.dimension_semantics<parallel>], iteration_bounds = array<i64: 1>, scalar_prefetch = 0 : i64, scratch_operands = 0 : i64, tpu.core_type = #tpu.core_type<tc>, window_params = [{transform_indices = @transform_0, window_bounds = array<i64: 16, 32>}, {pipeline_mode = #tpu.pipeline_mode<synchronous>, transform_indices = @transform_1, window_bounds = array<i64: 32, 4>}, {transform_indices = @transform_2, window_bounds = array<i64: 16, 2>}, {transform_indices = @transform_3, window_bounds = array<i64: 16, 2>}]} {
    %c0 = arith.constant 0 : index
    %c0_0 = arith.constant 0 : index
    %0 = vector.load %arg1[%c0, %c0_0] : memref<16x32xf32, #tpu.memory_space<vmem>>, vector<16x32xf32>
    %c0_1 = arith.constant 0 : index
    %c0_2 = arith.constant 0 : index
    %1 = vector.load %arg2[%c0_1, %c0_2] : memref<32x4xf32, #tpu.memory_space<vmem>>, vector<32x4xf32>
    %cst = arith.constant dense<0.000000e+00> : vector<16x4xf32>
    %2 = tpu.matmul %0, %1, %cst {dimension_numbers = #tpu.dot_dimension_numbers<[1], [0], [0], [1], [0, 0, 1, 1], [], []>} : vector<16x32xf32>, vector<32x4xf32>, vector<16x4xf32> -> vector<16x4xf32>
    %3 = tpu.iota {dimensions = array<i32: 1>} : vector<16x4xi32>
    %cst_3 = arith.constant dense<0xFF800000> : vector<16xf32>
    %4 = vector.multi_reduction <maximumf>, %2, %cst_3 [1] : vector<16x4xf32> to vector<16xf32>
    %5 = vector.shape_cast %4 : vector<16xf32> to vector<16x1xf32>
    %6 = vector.broadcast %5 : vector<16x1xf32> to vector<16x4xf32>
    %7 = arith.cmpf oge, %2, %6 : vector<16x4xf32>
    %c4_i32 = arith.constant 4 : i32
    %8 = vector.broadcast %c4_i32 : i32 to vector<16x4xi32>
    %9 = arith.select %7, %3, %8 : vector<16x4xi1>, vector<16x4xi32>
    %cst_4 = arith.constant dense<2147483647> : vector<16xi32>
    %10 = vector.multi_reduction <minsi>, %9, %cst_4 [1] : vector<16x4xi32> to vector<16xi32>
    %11 = vector.shape_cast %10 : vector<16xi32> to vector<16x1xi32>
    %12 = vector.broadcast %11 : vector<16x1xi32> to vector<16x4xi32>
    %13 = arith.cmpi eq, %3, %12 : vector<16x4xi32>
    %cst_5 = arith.constant 0xFF800000 : f32
    %14 = vector.broadcast %cst_5 : f32 to vector<16x4xf32>
    %15 = arith.select %13, %14, %2 : vector<16x4xi1>, vector<16x4xf32>
    %cst_6 = arith.constant dense<0xFF800000> : vector<16xf32>
    %16 = vector.multi_reduction <maximumf>, %15, %cst_6 [1] : vector<16x4xf32> to vector<16xf32>
    %17 = vector.shape_cast %16 : vector<16xf32> to vector<16x1xf32>
    %18 = vector.broadcast %17 : vector<16x1xf32> to vector<16x4xf32>
    %19 = arith.cmpf oge, %15, %18 : vector<16x4xf32>
    %c4_i32_7 = arith.constant 4 : i32
    %20 = vector.broadcast %c4_i32_7 : i32 to vector<16x4xi32>
    %21 = arith.select %19, %3, %20 : vector<16x4xi1>, vector<16x4xi32>
    %cst_8 = arith.constant dense<2147483647> : vector<16xi32>
    %22 = vector.multi_reduction <minsi>, %21, %cst_8 [1] : vector<16x4xi32> to vector<16xi32>
    %23 = vector.shape_cast %22 : vector<16xi32> to vector<16x1xi32>
    %cst_9 = arith.constant 1.000000e+00 : f32
    %24 = vector.broadcast %cst_9 : f32 to vector<16x1xf32>
    %25 = arith.subf %17, %5 : vector<16x1xf32>
    %26 = math.exp %25 : vector<16x1xf32>
    %27 = arith.addf %24, %26 : vector<16x1xf32>
    %cst_10 = arith.constant 9.99999968E-21 : f32
    %28 = vector.broadcast %cst_10 : f32 to vector<16x1xf32>
    %29 = arith.addf %27, %28 : vector<16x1xf32>
    %30 = tpu.reciprocal %29 : vector<16x1xf32> -> vector<16x1xf32>
    %c0_11 = arith.constant 0 : index
    %c0_12 = arith.constant 0 : index
    %31 = vector.load %arg3[%c0_11, %c0_12] : memref<16x2xi32, #tpu.memory_space<vmem>>, vector<16x1xi32>
    tpu.vector_store %arg3[%c0_11, %c0_12], %11 {strides = array<i32>} : memref<16x2xi32, #tpu.memory_space<vmem>>, vector<16x1xi32>,
    %32 = arith.mulf %24, %30 : vector<16x1xf32>
    %c0_13 = arith.constant 0 : index
    %c0_14 = arith.constant 0 : index
    %33 = vector.load %arg4[%c0_13, %c0_14] : memref<16x2xf32, #tpu.memory_space<vmem>>, vector<16x1xf32>
    tpu.vector_store %arg4[%c0_13, %c0_14], %32 {strides = array<i32>} : memref<16x2xf32, #tpu.memory_space<vmem>>, vector<16x1xf32>,
    %c0_15 = arith.constant 0 : index
    %c1 = arith.constant 1 : index
    %34 = vector.load %arg3[%c0_15, %c1] : memref<16x2xi32, #tpu.memory_space<vmem>>, vector<16x1xi32>
    tpu.vector_store %arg3[%c0_15, %c1], %23 {strides = array<i32>} : memref<16x2xi32, #tpu.memory_space<vmem>>, vector<16x1xi32>,
    %35 = arith.mulf %26, %30 : vector<16x1xf32>
    %c0_16 = arith.constant 0 : index
    %c1_17 = arith.constant 1 : index
    %36 = vector.load %arg4[%c0_16, %c1_17] : memref<16x2xf32, #tpu.memory_space<vmem>>, vector<16x1xf32>
    tpu.vector_store %arg4[%c0_16, %c1_17], %35 {strides = array<i32>} : memref<16x2xf32, #tpu.memory_space<vmem>>, vector<16x1xf32>,
    return
  }
  func.func @transform_0(%arg0: i32) -> (i32, i32) {
    %c0_i32 = arith.constant 0 : i32
    %c0_i32_0 = arith.constant 0 : i32
    return %arg0, %c0_i32 : i32, i32
  }
  func.func @transform_1(%arg0: i32) -> (i32, i32) {
    %c0_i32 = arith.constant 0 : i32
    %c0_i32_0 = arith.constant 0 : i32
    %c0_i32_1 = arith.constant 0 : i32
    return %c0_i32, %c0_i32_0 : i32, i32
  }
  func.func @transform_2(%arg0: i32) -> (i32, i32) {
    %c0_i32 = arith.constant 0 : i32
    %c0_i32_0 = arith.constant 0 : i32
    return %arg0, %c0_i32 : i32, i32
  }
  func.func @transform_3(%arg0: i32) -> (i32, i32) {
    %c0_i32 = arith.constant 0 : i32
    %c0_i32_0 = arith.constant 0 : i32
    return %arg0, %c0_i32 : i32, i32
  }
}

</mosaic_0001>

<bundles_post_ra>
// kernel: tpu_custom_call.1
= control target key start
LH: loop header
LB: loop body
LE: loop exit
PB: predicated region body
PF: predicated region fallthrough
CT: control target
= control target key end

     0   :  { %vm19_vm0 = vcmask 261120   ;;  %vm51_vm1 = vcmask 31744   ;;  %v49_v10 = vlaneseq  ;;  %vm174_vm6 = vcmask 7168   ;;  %s286_s1 = inlined_call_operand.vmem [shape: f32[32,4], index: 1, kind: input, shape index: {}]   ;;  %s287_s0 = inlined_call_operand.vmem [shape: f32[16,32], index: 0, kind: input, shape index: {}]   ;;  %s288_s2 = inlined_call_operand.vmem [shape: s32[16,2], index: 2, kind: output, shape index: {0}]   ;;  %s289_s3 = inlined_call_operand.vmem [shape: f32[16,2], index: 3, kind: output, shape index: {1}]  }
   0x1   :  { %v18_v0 = vld [vmem:[%s286_s1 + $0x18] sm:$0xff]  ;;  %v17_v1 = vld [vmem:[%s286_s1 + $0x10] sm:$0xff]  ;;  %v16_v2 = vld [vmem:[%s286_s1 + $0x8] sm:$0xff]  ;;  %vm179_vm15 = vcmask 15368  }
   0x2   :  { %38 = vmatpush.msra.mxu0 %v18_v0  ;;  %196 = vmatpush.msra.mxu1 %v18_v0  ;;  %v15_v3 = vld [vmem:[%s286_s1] sm:$0xff]  ;;  %v14_v5 = vld [vmem:[%s287_s0 + $0x8] sm:$0xff]  ;;  %v50_v11 = vand.u32 127, %v49_v10 }
   0x3   :  { %v13_v4 = vld [vmem:[%s287_s0] sm:$0xff] }
   0x4   :  { %39 = vmatpush.msra.mxu0 %v17_v1  ;;  %197 = vmatpush.msra.mxu1 %v17_v1 }
   0x6   :  { %40 = vmatpush.msra.mxu0 %v16_v2  ;;  %198 = vmatpush.msra.mxu1 %v16_v2 }
   0x8   :  { %41 = vmatpush.msra.mxu0 %v15_v3  ;;  %199 = vmatpush.msra.mxu1 %v15_v3 }
   0x9   :  { %194 = vmatmul.msk.f32.vlgmr.msra.gmra.mxu0 %vm19_vm0, %v13_v4  ;;  %195 = vmatmul.msk.f32.vlgmr.msra.gmra.mxu1 %vm19_vm0, %v14_v5 }
  0x86   :  { %v43_v6 = vpop.f32.mrf.mxu0  ;;  %v46_v8 = vpop.f32.mrf.mxu1 }
  0x87   :  { %v52_v7 = vsel %vm51_vm1, %v43_v6, -inf  ;;  %v55_v9 = vsel %vm51_vm1, %v46_v8, -inf }
  0x88   :  { %53 = vmax.xlane.f32.xlu0 %v52_v7 }
  0x90   :  { %56 = vmax.xlane.f32.xlu0 %v55_v9 }
  0xfb   :  { %v54_v12 = vpop.xlane.xlu0 %53 }
  0xfc   :  { %vm58_vm2 = vcmp.ge.f32.partialorder %v43_v6, %v54_v12 }
  0xfd   :  { %v60_v13 = vsel %vm58_vm2, %v50_v11, 4 }
  0xfe   :  { %v62_v14 = vsel %vm51_vm1, %v60_v13, 2147483647 }
  0xff   :  { %v64_v15 = vshra.s32 %v62_v14, 16  ;;  %v63_v22 = vand.u32 65535, %v62_v14 }
 0x101   :  { %v66_v16 = vcvt.s32.f32 %v64_v15  ;;  %v65_v24 = vcvt.s32.f32 %v63_v22 }
 0x103   :  { %67 = vmin.xlane.f32.xlu1 %v66_v16  ;;  %v57_v17 = vpop.xlane.xlu0 %56 }
 0x104   :  { %vm59_vm3 = vcmp.ge.f32.partialorder %v46_v8, %v57_v17 }
 0x105   :  { %v61_v18 = vsel %vm59_vm3, %v50_v11, 4 }
 0x106   :  { %v77_v19 = vsel %vm51_vm1, %v61_v18, 2147483647 }
 0x107   :  { %v79_v20 = vshra.s32 %v77_v19, 16  ;;  %v78_v26 = vand.u32 65535, %v77_v19 }
 0x109   :  { %v81_v21 = vcvt.s32.f32 %v79_v20  ;;  %v80_v28 = vcvt.s32.f32 %v78_v26 }
 0x10b   :  { %82 = vmin.xlane.f32.xlu1 %v81_v21 }
 0x176   :  { %v68_v23 = vpop.xlane.xlu1 %67 }
 0x177   :  { %vm69_vm4 = vcmp.eq.f32.partialorder %v66_v16, %v68_v23  ;;  %v74_v30 = vcvt.f32.s32 %v68_v23 }
 0x178   :  { %v70_v25 = vsel %vm69_vm4, %v65_v24, inf }
 0x179   :  { %71 = vmin.xlane.f32.xlu2 %v70_v25  ;;  %v75_v32 = vshll.u32 %v74_v30, 16 }
 0x17e   :  { %v83_v27 = vpop.xlane.xlu1 %82 }
 0x17f   :  { %vm84_vm5 = vcmp.eq.f32.partialorder %v81_v21, %v83_v27  ;;  %v89_v35 = vcvt.f32.s32 %v83_v27 }
 0x180   :  { %v85_v29 = vsel %vm84_vm5, %v80_v28, inf }
 0x181   :  { %86 = vmin.xlane.f32.xlu2 %v85_v29  ;;  %v90_v39 = vshll.u32 %v89_v35, 16 }
 0x1ec   :  { %v72_v31 = vpop.xlane.xlu2 %71 }
 0x1ed   :  { %v73_v33 = vcvt.f32.s32 %v72_v31 }
 0x1ef   :  { %v76_v34 = vadd.s32 %v75_v32, %v73_v33 }
 0x1f1   :  { %175 = vst.msk [vmem:[%s288_s2] sm:$0xff] %vm174_vm6, %v76_v34  ;;  %vm92_vm7 = vcmp.eq.s32.totalorder %v50_v11, %v76_v34 }
 0x1f2   :  { %v94_v36 = vsel %vm92_vm7, -inf, %v43_v6 }
 0x1f3   :  { %v96_v37 = vsel %vm51_vm1, %v94_v36, -inf }
 0x1f4   :  { %97 = vmax.xlane.f32.xlu0 %v96_v37  ;;  %v87_v38 = vpop.xlane.xlu2 %86 }
 0x1f5   :  { %v88_v40 = vcvt.f32.s32 %v87_v38 }
 0x1f7   :  { %v91_v41 = vadd.s32 %v90_v39, %v88_v40 }
 0x1f9   :  { %176 = vst.msk [vmem:[%s288_s2 + $0x8] sm:$0xff] %vm174_vm6, %v91_v41  ;;  %vm93_vm8 = vcmp.eq.s32.totalorder %v50_v11, %v91_v41 }
 0x1fa   :  { %v95_v42 = vsel %vm93_vm8, -inf, %v46_v8 }
 0x1fb   :  { %v99_v43 = vsel %vm51_vm1, %v95_v42, -inf }
 0x1fc   :  { %100 = vmax.xlane.f32.xlu1 %v99_v43 }
 0x267   :  { %v98_v44 = vpop.xlane.xlu0 %97 }
 0x268   :  { %vm102_vm9 = vcmp.ge.f32.partialorder %v94_v36, %v98_v44  ;;  %v136_v45 = vsub.f32 %v98_v44, %v54_v12 }
 0x269   :  { %v104_v46 = vsel %vm102_vm9, %v50_v11, 4 }
 0x26a   :  { %v138_v47 = vmul.f32 1.442695, %v136_v45  ;;  %v106_v48 = vsel %vm51_vm1, %v104_v46, 2147483647 }
 0x26b   :  { %v108_v49 = vshra.s32 %v106_v48, 16  ;;  %v107_v22 = vand.u32 65535, %v106_v48 }
 0x26c   :  { %200 = vpow2.f32 %v138_v47 }
 0x26d   :  { %v110_v50 = vcvt.s32.f32 %v108_v49  ;;  %v109_v24 = vcvt.s32.f32 %v107_v22 }
 0x26f   :  { %v101_v51 = vpop.xlane.xlu1 %100  ;;  %111 = vmin.xlane.f32.xlu2 %v110_v50 }
 0x270   :  { %vm103_vm10 = vcmp.ge.f32.partialorder %v95_v42, %v101_v51  ;;  %v137_v52 = vsub.f32 %v101_v51, %v57_v17 }
 0x271   :  { %v105_v53 = vsel %vm103_vm10, %v50_v11, 4 }
 0x272   :  { %v201_v54 = vpop.eup %200  ;;  %v140_v55 = vmul.f32 1.442695, %v137_v52  ;;  %v121_v56 = vsel %vm51_vm1, %v105_v53, 2147483647 }
 0x273   :  { %v142_v57 = vadd.f32 1.0, %v201_v54  ;;  %v123_v58 = vshra.s32 %v121_v56, 16  ;;  %v122_v26 = vand.u32 65535, %v121_v56 }
 0x274   :  { %202 = vpow2.f32 %v140_v55 }
 0x275   :  { %v144_v59 = vadd.f32 1e-20, %v142_v57  ;;  %v125_v60 = vcvt.s32.f32 %v123_v58  ;;  %v124_v28 = vcvt.s32.f32 %v122_v26 }
 0x277   :  { %204 = vrcp.f32 %v144_v59  ;;  %126 = vmin.xlane.f32.xlu0 %v125_v60  ;;  %v157_v3 = vand.u32 2147483648, %v144_v59  ;;  %v155_v5 = vand.u32 2147483647, %v144_v59  ;;  %vm151_vm12 = vweird.f32 %v144_v59 }
 0x279   :  { %v158_v8 = vor.u32 1.1754944e-38, %v157_v3  ;;  %vm156_vm14 = vcmp.eq.f32.partialorder %v155_v5, 8.507059e+37 }
 0x27a   :  { %v203_v61 = vpop.eup %202 }
 0x27b   :  { %v143_v62 = vadd.f32 1.0, %v203_v61 }
 0x27d   :  { %v205_v63 = vpop.eup %204  ;;  %v145_v0 = vadd.f32 1e-20, %v143_v62 }
 0x27e   :  { %v147_v1 = vmul.f32 %v205_v63, %v144_v59  ;;  %vm152_vm11 = vweird.f32 %v205_v63 }
 0x27f   :  { %206 = vrcp.f32 %v145_v0  ;;  %vm153_vm13 = vmor %vm151_vm12, %vm152_vm11  ;;  %v171_v14 = vand.u32 2147483648, %v145_v0  ;;  %v169_v16 = vand.u32 2147483647, %v145_v0  ;;  %vm165_vm1 = vweird.f32 %v145_v0 }
 0x280   :  { %v148_v2 = vsub.f32 1.0, %v147_v1 }
 0x281   :  { %v172_v18 = vor.u32 1.1754944e-38, %v171_v14  ;;  %vm170_vm3 = vcmp.eq.f32.partialorder %v169_v16, 8.507059e+37 }
 0x282   :  { %v149_v4 = vmul.f32 %v205_v63, %v148_v2 }
 0x284   :  { %v150_v6 = vadd.f32 %v205_v63, %v149_v4 }
 0x285   :  { %v207_v7 = vpop.eup %206 }
 0x286   :  { %v154_v9 = vsel %vm153_vm13, %v205_v63, %v150_v6  ;;  %v161_v10 = vmul.f32 %v207_v7, %v145_v0  ;;  %vm166_vm0 = vweird.f32 %v207_v7 }
 0x287   :  { %v159_v11 = vsel %vm156_vm14, %v158_v8, %v154_v9  ;;  %vm167_vm2 = vmor %vm165_vm1, %vm166_vm0 }
 0x288   :  { %177 = vst.msk [vmem:[%s289_s3] sm:$0xff] %vm174_vm6, %v159_v11  ;;  %v182_v12 = vmul.f32 %v201_v54, %v159_v11  ;;  %v162_v13 = vsub.f32 1.0, %v161_v10 }
 0x28a   :  { %v163_v15 = vmul.f32 %v207_v7, %v162_v13  ;;  %184 = vst.msk [vmem:[%s289_s3] sm:$0xff] %vm179_vm15, %v182_v12 }
 0x28c   :  { %v164_v17 = vadd.f32 %v207_v7, %v163_v15 }
 0x28e   :  { %v168_v19 = vsel %vm167_vm2, %v207_v7, %v164_v17 }
 0x28f   :  { %v173_v20 = vsel %vm170_vm3, %v172_v18, %v168_v19 }
 0x290   :  { %178 = vst.msk [vmem:[%s289_s3 + $0x8] sm:$0xff] %vm174_vm6, %v173_v20  ;;  %v183_v21 = vmul.f32 %v203_v61, %v173_v20 }
 0x292   :  { %185 = vst.msk [vmem:[%s289_s3 + $0x8] sm:$0xff] %vm179_vm15, %v183_v21 }
 0x2e2   :  { %v112_v23 = vpop.xlane.xlu2 %111 }
 0x2e3   :  { %vm113_vm4 = vcmp.eq.f32.partialorder %v110_v50, %v112_v23  ;;  %v118_v30 = vcvt.f32.s32 %v112_v23 }
 0x2e4   :  { %v114_v25 = vsel %vm113_vm4, %v109_v24, inf }
 0x2e5   :  { %115 = vmin.xlane.f32.xlu1 %v114_v25  ;;  %v119_v32 = vshll.u32 %v118_v30, 16 }
 0x2ea   :  { %v127_v27 = vpop.xlane.xlu0 %126 }
 0x2eb   :  { %vm128_vm5 = vcmp.eq.f32.partialorder %v125_v60, %v127_v27  ;;  %v133_v35 = vcvt.f32.s32 %v127_v27 }
 0x2ec   :  { %v129_v29 = vsel %vm128_vm5, %v124_v28, inf }
 0x2ed   :  { %130 = vmin.xlane.f32.xlu2 %v129_v29  ;;  %v134_v37 = vshll.u32 %v133_v35, 16 }
 0x358   :  { %v116_v31 = vpop.xlane.xlu1 %115 }
 0x359   :  { %v117_v33 = vcvt.f32.s32 %v116_v31 }
 0x35b   :  { %v120_v34 = vadd.s32 %v119_v32, %v117_v33 }
 0x35d   :  { %180 = vst.msk [vmem:[%s288_s2] sm:$0xff] %vm179_vm15, %v120_v34 }
 0x360   :  { %v131_v36 = vpop.xlane.xlu2 %130 }
 0x361   :  { %v132_v38 = vcvt.f32.s32 %v131_v36 }
 0x363   :  { %v135_v39 = vadd.s32 %v134_v37, %v132_v38 }
 0x365   :  { %181 = vst.msk [vmem:[%s288_s2 + $0x8] sm:$0xff] %vm179_vm15, %v135_v39 }

</bundles_post_ra>
